<compile_context>
chip_gen: v6e
topology: v6e:2x2x1
jax: 0.10.0
libtpu: 0.0.40
codegen_flags: <defaults>
</compile_context>

<pallas_src>
import functools

import jax
import jax.numpy as jnp
from jax import lax
from jax.experimental import pallas as pl
from jax.experimental.pallas import tpu as pltpu


def _annealer_kernel(step_ref, scale_ref, n_ref, new_step_ref, new_scale_ref,
                     *, cycle_length: int, max_value: float,
                     warmup_batches: int):
    """Closed-form advance of (current_step, scale) by n forward() calls."""
    cl = jnp.int32(cycle_length)
    wb = jnp.int32(warmup_batches)
    mv = jnp.float32(max_value)
    # cycle_length / 2 as a compile-time immediate (f32; ~1 ulp vs. PyTorch's
    # float64 division -- well inside the usual tolerance).
    half = jnp.float32(float(cycle_length) / 2.0)

    step = step_ref[0]
    scale = scale_ref[0]
    n = n_ref[0]

    new_step = step + n
    last = new_step - 1                      # step value seen by the final call

    # Clamp keeps rem's numerator non-negative during warmup; the result is
    # masked by the select below anyway (matches Python % semantics here).
    cycle_pos = lax.rem(jnp.maximum(last - wb, jnp.int32(0)), cl)
    cand = mv * (jnp.float32(1.0)
                 - jnp.abs(cycle_pos.astype(jnp.float32) / half
                           - jnp.float32(1.0)))

    keep_old = jnp.logical_or(n <= 0, last < wb)   # still warming up / no-op
    new_scale = jnp.where(keep_old, scale, cand)

    new_step_ref[0] = new_step
    new_scale_ref[0] = new_scale


@functools.lru_cache(maxsize=None)
def _build_annealer_call(cycle_length: int, max_value: float,
                         warmup_batches: int):
    """One compile per hyper-parameter set; n_steps is a runtime SMEM scalar."""
    kernel = functools.partial(
        _annealer_kernel, cycle_length=cycle_length, max_value=max_value,
        warmup_batches=warmup_batches)
    smem = pl.BlockSpec(memory_space=pltpu.MemorySpace.SMEM)
    call = pl.pallas_call(
        kernel,
        in_specs=[smem, smem, smem],          # step, scale, n_steps
        out_specs=(smem, smem),
        out_shape=(jax.ShapeDtypeStruct((1,), jnp.int32),
                   jax.ShapeDtypeStruct((1,), jnp.float32)),
        # state is updated in place: step -> new_step, scale -> new_scale
        input_output_aliases={0: 0, 1: 1},
    )
    # Donate the state buffers so aliasing is realized without copies.
    return jax.jit(call, donate_argnums=(0, 1))


class CyclicBatchAnnealer:
    """JAX/Pallas mirror of the PyTorch module (stateful wrapper)."""

    def __init__(self, cycle_length: int = 20 * 151, max_value: float = 1.0,
                 warmup_batches: int = 4 * 152) -> None:
        assert cycle_length > 0, "cycle_length must be positive"
        self.update_type = "batch"
        self.cycle_length = int(cycle_length)
        self.max_value = float(max_value)
        self.warmup_batches = int(warmup_batches)
        # State stays on-device; no host syncs on the hot path.
        self._step = jnp.zeros((1,), jnp.int32)
        self._scale = jnp.zeros((1,), jnp.float32)
        # Cached n=1 operand so per-batch forward() does no H2D transfer.
        self._n_one = jnp.ones((1,), jnp.int32)
        self._call = _build_annealer_call(self.cycle_length, self.max_value,
                                          self.warmup_batches)

    # TODO(synk): for real training loops, fuse this 10-op scalar update into
    # the consumer kernel that uses `scale` (pass `step` via scalar prefetch)
    # instead of paying a standalone launch per batch.
    def advance(self, n_steps: int = 1) -> None:
        """Advance the annealer by `n_steps` forward() calls in ONE launch."""
        n = self._n_one if n_steps == 1 else jnp.full((1,), int(n_steps),
                                                      jnp.int32)
        self._step, self._scale = self._call(self._step, self._scale, n)

    def forward(self) -> None:
        # PyTorch forward returns None; it only mutates state.
        self.advance(1)

    __call__ = forward

    # Host-syncing accessors -- only read at logging boundaries.
    @property
    def current_step(self) -> int:
        return int(jax.device_get(self._step)[0])

    @property
    def scale(self) -> float:
        return float(jax.device_get(self._scale)[0])


def _reference_forward(state, cycle_length, max_value, warmup_batches):
    """Pure-Python replica of the PyTorch forward for verification."""
    step, scale = state
    if step < warmup_batches:
        step += 1
    else:
        cycle_pos = (step - warmup_batches) % cycle_length
        scale = max_value * (1 - abs(cycle_pos / (cycle_length / 2) - 1))
        step += 1
    return step, scale


if __name__ == "__main__":
    # Module takes no tensor inputs; key created for determinism convention.
    _ = jax.random.PRNGKey(0)

    cycle_length = 20
    max_value = 1.0
    warmup_batches = 6
    n_calls = 3 * cycle_length + warmup_batches + 5

    # Reference trajectory.
    ref_state = (0, 0.0)
    ref_traj = []
    for _ in range(n_calls):
        ref_state = _reference_forward(ref_state, cycle_length, max_value,
                                       warmup_batches)
        ref_traj.append(ref_state)

    # (a) Faithful per-batch forward() calls (one launch per step).
    ann_a = CyclicBatchAnnealer(cycle_length=cycle_length,
                                max_value=max_value,
                                warmup_batches=warmup_batches)
    for _ in range(n_calls):
        ann_a.forward()
    jax.block_until_ready((ann_a._step, ann_a._scale))

    # (b) Amortized: all steps folded into ONE launch (runtime n, closed form).
    ann_b = CyclicBatchAnnealer(cycle_length=cycle_length,
                                max_value=max_value,
                                warmup_batches=warmup_batches)
    ann_b.advance(n_calls)
    jax.block_until_ready((ann_b._step, ann_b._scale))

    # (c) Mixed chunk sizes (exercises runtime n without recompiles).
    ann_c = CyclicBatchAnnealer(cycle_length=cycle_length,
                                max_value=max_value,
                                warmup_batches=warmup_batches)
    remaining = n_calls
    for chunk in (1, 3, 7, 11):
        ann_c.advance(chunk)
        remaining -= chunk
    ann_c.advance(remaining)
    jax.block_until_ready((ann_c._step, ann_c._scale))

    for name, ann in (("per-step", ann_a), ("batched", ann_b),
                      ("chunked", ann_c)):
        assert ann.current_step == ref_state[0], (
            f"{name}: step mismatch: {ann.current_step} vs {ref_state[0]}")
        assert abs(ann.scale - ref_state[1]) < 1e-6, (
            f"{name}: scale mismatch: {ann.scale} vs {ref_state[1]}")

    # Spot-check a few intermediate points of the per-step trajectory too.
    ann_d = CyclicBatchAnnealer(cycle_length=cycle_length,
                                max_value=max_value,
                                warmup_batches=warmup_batches)
    for i in range(warmup_batches + 12):
        ann_d.forward()
        exp_step, exp_scale = ref_traj[i]
        assert ann_d.current_step == exp_step
        assert abs(ann_d.scale - exp_scale) < 1e-6

    print("KERNEL_OK")
</pallas_src>

<mosaic_0001>
module attributes {stable_mosaic.version = 11 : i64} {
  func.func @_annealer_kernel(%arg0: memref<1xi32, #tpu.memory_space<smem>>, %arg1: memref<1xf32, #tpu.memory_space<smem>>, %arg2: memref<1xi32, #tpu.memory_space<smem>>, %arg3: memref<1xi32, #tpu.memory_space<smem>>, %arg4: memref<1xf32, #tpu.memory_space<smem>>) attributes {dimension_semantics = [], scalar_prefetch = 0 : i64, scratch_operands = 0 : i64, tpu.core_type = #tpu.core_type<tc>} {
    %c0 = arith.constant 0 : index
    %0 = memref.load %arg0[%c0] : memref<1xi32, #tpu.memory_space<smem>>
    %c0_0 = arith.constant 0 : index
    %1 = memref.load %arg1[%c0_0] : memref<1xf32, #tpu.memory_space<smem>>
    %c0_1 = arith.constant 0 : index
    %2 = memref.load %arg2[%c0_1] : memref<1xi32, #tpu.memory_space<smem>>
    %3 = arith.addi %0, %2 : i32
    %c1_i32 = arith.constant 1 : i32
    %4 = arith.subi %3, %c1_i32 : i32
    %c6_i32 = arith.constant 6 : i32
    %5 = arith.subi %4, %c6_i32 : i32
    %c0_i32 = arith.constant 0 : i32
    %6 = arith.maxsi %5, %c0_i32 : i32
    %c20_i32 = arith.constant 20 : i32
    %7 = arith.remsi %6, %c20_i32 : i32
    %8 = arith.sitofp %7 : i32 to f32
    %cst = arith.constant 1.000000e+01 : f32
    %9 = arith.divf %8, %cst : f32
    %cst_2 = arith.constant 1.000000e+00 : f32
    %10 = arith.subf %9, %cst_2 : f32
    %11 = math.absf %10 : f32
    %cst_3 = arith.constant 1.000000e+00 : f32
    %12 = arith.subf %cst_3, %11 : f32
    %cst_4 = arith.constant 1.000000e+00 : f32
    %13 = arith.mulf %cst_4, %12 : f32
    %c0_i32_5 = arith.constant 0 : i32
    %14 = arith.cmpi sle, %2, %c0_i32_5 : i32
    %c6_i32_6 = arith.constant 6 : i32
    %15 = arith.cmpi slt, %4, %c6_i32_6 : i32
    %16 = arith.ori %14, %15 : i1
    %17 = arith.select %16, %1, %13 : f32
    %c0_7 = arith.constant 0 : index
    %18 = memref.load %arg3[%c0_7] : memref<1xi32, #tpu.memory_space<smem>>
    memref.store %3, %arg3[%c0_7] : memref<1xi32, #tpu.memory_space<smem>>
    %c0_8 = arith.constant 0 : index
    %19 = memref.load %arg4[%c0_8] : memref<1xf32, #tpu.memory_space<smem>>
    memref.store %17, %arg4[%c0_8] : memref<1xf32, #tpu.memory_space<smem>>
    return
  }
}

</mosaic_0001>

<bundles_post_ra>
// kernel: tpu_custom_call.1
= control target key start
LH: loop header
LB: loop body
LE: loop exit
PB: predicated region body
PF: predicated region fallthrough
CT: control target
= control target key end

     0   :  { %13 = vsyncpa [#allocation6], 0  ;;  %s155_s0 = inlined_call_operand.<no memory space> [shape: s32[1], index: 0, kind: input, shape index: {}, may-alias: {0,3}]   ;;  %s156_s1 = inlined_call_operand.<no memory space> [shape: f32[1], index: 1, kind: input, shape index: {}, may-alias: {1,4}]   ;;  %s157_s2 = inlined_call_operand.<no memory space> [shape: s32[1], index: 2, kind: input, shape index: {}]   ;;  %s158_s3 = inlined_call_operand.hbm [shape: s32[1], index: 3, kind: output, shape index: {0}, may-alias: {0,3}]   ;;  %s159_s4 = inlined_call_operand.hbm [shape: f32[1], index: 4, kind: output, shape index: {1}, may-alias: {1,4}]  }
   0x1   :  { %s24_s19 = sadd.s32 %s157_s2, %s155_s0 }
   0x2   :  { %14 = vsyncpa [#allocation8], 0  ;;  %s77_s20 = sadd.s32 4294967289, %s24_s19  ;;  %48 = sst [smem:[#allocation5]] %s24_s19 }
   0x3   :  { %p27_p0 = scmp.gt.s32.totalorder %s77_s20, 0  ;;  %s110_s21 = smov [#allocation5]  }
   0x4   :  { %58 = dma.smem_to_hbm %s110_s21, 16, %s158_s3, [#allocation6]  }
   0x5   :  { %s161_s20 = smov (!%p27_p0, %s77_s20), 0  ;;  %s76_s24 = sadd.s32 4294967295, %s24_s19 }
   0x6   :  { %88 = sdivrem.u32 %s161_s20, 20  ;;  %p44_p1 = scmp.lt.s32.totalorder %s76_s24, 6 }
   0x7   :  { %p43_p2 = scmp.le.s32.totalorder %s157_s2, 0  ;;  %s111_s3 = smov [#allocation7]  }
   0x9   :  { %p45_p3 = por %p44_p1, %p43_p2 }
   0xf   :  { %s89_s25 = spop.drf %88 }
  0x10   :  { %s36_s26 = scvt.s32.f32 %s89_s25 }
  0x12   :  { %s39_s0 = smul.f32 0.1, %s36_s26 }
  0x14   :  { %s84_s29 = sadd.f32 -1.0, %s39_s0 }
  0x16   :  { %s41_s30 = sand.u32 2147483647, %s84_s29 }
  0x17   :  { %s42_s5 = ssub.f32 1.0, %s41_s30 }
  0x19   :  { %s163_s1 = smov (!%p45_p3, %s156_s1), %s42_s5 }
  0x1a   :  { %50 = sst [smem:[#allocation7]] %s163_s1 }
  0x1b   :  { %66 = dma.smem_to_hbm %s111_s3, 16, %s159_s4, [#allocation8]  }
  0x1c   :  { %106 = dma.done.wait [#allocation6], 16  }
  0x1d   :  { %107 = vsyncadd [#allocation6], 4294967280 }
  0x1e   :  { %108 = dma.done.wait [#allocation8], 16  }
  0x1f   :  { %109 = vsyncadd [#allocation8], 4294967280 }
  0x20   :  { %73 = sfence }
  0x21   :  { %74 = vsyncpa [#allocation6], 1 }
  0x22   :  { %75 = vsyncpa [#allocation8], 1 }

</bundles_post_ra>
